<compile_context>
chip_gen: v7x
topology: tpu7x:2x2x1
jax: 0.10.0
libtpu: 0.0.40
codegen_flags: <defaults>
</compile_context>

<pallas_src>
import jax
import jax.numpy as jnp
import numpy as np
from jax import lax
from jax.experimental import pallas as pl
from jax.experimental.pallas import tpu as pltpu

_TOP = 8  # interior rows start at a sublane-tile-aligned offset inside each slab


def _basic_block_kernel(x_ref, m1_ref, b1_ref, m2_ref, b2_ref, out_ref, pad_ref):
    # x_ref  : (B_t, H, WC)          lane-dense NHWC input (W*C on the lane axis)
    # m*_ref : (3*WC, WC)   bf16     banded 3x3-conv matrices (BN scale folded in)
    # b*_ref : (1, WC)      f32      folded BN bias, tiled across W
    # out_ref: (B_t, H, WC)
    # pad_ref: (B_t, H+16, WC) f32   per-image slabs; interior rows [_TOP, _TOP+H),
    #                                H-direction zero halo at rows _TOP-1 and _TOP+H
    B_t, H, WC = out_ref.shape
    M = B_t * H

    # Zero the guard/halo row blocks once (aligned 8-row stores).  Interior rows
    # are fully overwritten below, so the scratch carries no cross-step state
    # (safe with the 'parallel' batch axis split across TensorCores).
    pad_ref[:, 0:_TOP, :] = jnp.zeros((B_t, _TOP, WC), jnp.float32)
    pad_ref[:, _TOP + H:_TOP + H + 8, :] = jnp.zeros((B_t, 8, WC), jnp.float32)

    def conv3x3(m_ref):
        # One fused (M, 3*WC) x (3*WC, WC) MXU matmul: the three row-shifted
        # windows are lane-concatenated (128-lane granular, no intra-vreg data
        # movement) into a single bf16 LHS; accumulate in f32.
        lhs = jnp.concatenate(
            [pad_ref[:, _TOP - 1 + kh:_TOP - 1 + kh + H, :].reshape(M, WC)
             for kh in range(3)], axis=1)
        return jnp.dot(lhs.astype(jnp.bfloat16), m_ref[...],
                       preferred_element_type=jnp.float32)

    # ---- conv1 (BN1 scale pre-folded) + BN1 bias + Dropout(p=0) + ReLU ----
    pad_ref[:, _TOP:_TOP + H, :] = x_ref[...]          # aligned interior fill
    y1 = jnp.maximum(conv3x3(m1_ref) + b1_ref[...], 0.0)        # (M, WC) f32

    # ---- conv2 (BN2 scale pre-folded), reusing the same padded slabs ----
    pad_ref[:, _TOP:_TOP + H, :] = y1.reshape(B_t, H, WC)
    acc2 = conv3x3(m2_ref)

    # ---- BN2 bias + Dropout(p=0) + identity shortcut + final ReLU ----
    # Re-read x here (it is NOT kept live across the convs); single aligned,
    # lane-dense, unmasked store of the whole output block.
    x = x_ref[...].reshape(M, WC)
    out = jnp.maximum(acc2 + b2_ref[...] + x, 0.0)
    out_ref[...] = out.reshape(B_t, H, WC).astype(out_ref.dtype)


def _fold_bn(gamma, beta, mean, var, eps=1e-5):
    scale = gamma / jnp.sqrt(var + eps)
    bias = beta - mean * scale
    return scale, bias


def _band_weights(w_hwio, width):
    """(3, 3, Cin, Cout) HWIO -> (3, W*Cin, W*Cout) banded conv matrices.

    M[kh, w'*Cin + ci, w*Cout + co] = w[kh, kw, ci, co] with kw = w' - w + 1
    when 0 <= kw < 3, else 0.  The band structure implements the conv's W-axis
    zero padding for free (out-of-range taps simply have no row).
    """
    _, _, cin, cout = w_hwio.shape
    shift = jnp.stack([jnp.eye(width, k=1 - kw, dtype=w_hwio.dtype)
                       for kw in range(3)])                      # (3, W, W)
    m = jnp.einsum('kab,hkio->haibo', shift, w_hwio)             # (3, W, Cin, W, Cout)
    return m.reshape(3, width * cin, width * cout)


def _pick_batch_tile(n, target=8):
    """Largest divisor of n that is <= target (target=8 -> M=B_t*H>=128 for H=16).

    For large N on v6e/v7x, target=16 (M>=256) fills the 256-tall MXU better.
    """
    bt = min(target, n)
    while n % bt:
        bt -= 1
    return bt


def basic_block_forward(x_nchw, w1_hwio, bn1, w2_hwio, bn2, eps=1e-5, block_batch=8):
    """x_nchw: (N, Cin, H, W). Returns (N, C, H, W) like the PyTorch module (eval)."""
    N, Cin, H, W = x_nchw.shape
    C = w1_hwio.shape[-1]
    assert w1_hwio.shape == (3, 3, Cin, C) and w2_hwio.shape == (3, 3, C, C)
    # Identity shortcut (downsample=None) => stride 1 and inplanes == planes.
    assert Cin == C, "identity shortcut requires inplanes == planes"
    assert H % 8 == 0, "H must be sublane-tile aligned for the padded slabs"

    WC = W * C
    B_t = _pick_batch_tile(N, block_batch)

    # Fold eval-mode BatchNorm: scale goes into the conv weights (conv is
    # linear); bias is pre-tiled to a lane-dense (1, W*C) row.  Weights are
    # pre-cast to bf16 (f32 accumulation happens in the kernel).
    s1, b1 = _fold_bn(*bn1, eps=eps)
    s2, b2 = _fold_bn(*bn2, eps=eps)
    m1 = _band_weights(w1_hwio * s1, W).reshape(3 * WC, WC).astype(jnp.bfloat16)
    m2 = _band_weights(w2_hwio * s2, W).reshape(3 * WC, WC).astype(jnp.bfloat16)
    b1_t = jnp.tile(b1, W).reshape(1, WC)
    b2_t = jnp.tile(b2, W).reshape(1, WC)

    # NCHW -> lane-dense (N, H, W*C); no wrapper-side spatial padding.
    x = jnp.transpose(x_nchw, (0, 2, 3, 1)).reshape(N, H, WC)

    # TODO(synk): when W*C scales up, single-buffer the constant-index weight
    # BlockSpecs (pipeline_mode=pl.Buffered(1)) to reclaim their double-buffer
    # VMEM; at this size they are only 2 x 96 KiB so it is left at the default.
    out = pl.pallas_call(
        _basic_block_kernel,
        out_shape=jax.ShapeDtypeStruct((N, H, WC), x.dtype),
        grid_spec=pltpu.PrefetchScalarGridSpec(
            num_scalar_prefetch=0,
            grid=(N // B_t,),
            in_specs=[
                pl.BlockSpec((B_t, H, WC), lambda n: (n, 0, 0)),
                pl.BlockSpec((3 * WC, WC), lambda n: (0, 0)),
                pl.BlockSpec((1, WC), lambda n: (0, 0)),
                pl.BlockSpec((3 * WC, WC), lambda n: (0, 0)),
                pl.BlockSpec((1, WC), lambda n: (0, 0)),
            ],
            out_specs=pl.BlockSpec((B_t, H, WC), lambda n: (n, 0, 0)),
            scratch_shapes=[pltpu.VMEM((B_t, H + 16, WC), jnp.float32)],
        ),
        compiler_params=pltpu.CompilerParams(
            dimension_semantics=("parallel",),
            # Tiny working set (<1 MiB/step incl. double buffers) -- fits the
            # default scoped VMEM on v5e/v6e and v7x's 64 MiB with huge margin.
            vmem_limit_bytes=32 * 1024 * 1024,
        ),
    )(x, m1, b1_t, m2, b2_t)

    return jnp.transpose(out.reshape(N, H, W, C), (0, 3, 1, 2))


def ref_basic_block(x_nchw, w1_hwio, bn1, w2_hwio, bn2, eps=1e-5):
    """Pure-JAX reference (XLA convs), eval-mode BN, bf16 conv operands to match
    the kernel's bf16-operand / f32-accumulate MXU path."""
    s1, b1 = _fold_bn(*bn1, eps=eps)
    s2, b2 = _fold_bn(*bn2, eps=eps)
    x = jnp.transpose(x_nchw, (0, 2, 3, 1))
    dn = ('NHWC', 'HWIO', 'NHWC')

    def conv(a, w):
        return lax.conv_general_dilated(
            a.astype(jnp.bfloat16), w.astype(jnp.bfloat16), (1, 1), ((1, 1), (1, 1)),
            dimension_numbers=dn, preferred_element_type=jnp.float32)

    y = jnp.maximum(conv(x, w1_hwio * s1) + b1, 0.0)
    y = conv(y, w2_hwio * s2) + b2
    y = jnp.maximum(y + x, 0.0)
    return jnp.transpose(y, (0, 3, 1, 2))


if __name__ == "__main__":
    # inplanes = planes = 8, stride = 1, downsample = None (identity shortcut),
    # spatial 16x16 (so W*C = 128 lanes).  Batch 16 exercises the batch tiling:
    # B_t = 8 => M = 128 rows per MXU push, grid = (2,) parallel steps.
    N, C, H, W = 16, 8, 16, 16

    key = jax.random.PRNGKey(0)
    kx, kw1, kw2, kg1, kb1, km1, kv1, kg2, kb2, km2, kv2 = jax.random.split(key, 11)

    x = jax.random.normal(kx, (N, C, H, W), jnp.float32)           # NCHW like PyTorch
    w1 = jax.random.normal(kw1, (3, 3, C, C), jnp.float32) * 0.1   # HWIO
    w2 = jax.random.normal(kw2, (3, 3, C, C), jnp.float32) * 0.1   # HWIO

    # BatchNorm parameters / running stats (eval mode).
    # TODO(synk): training-mode BatchNorm (batch statistics) and Dropout p>0 are
    # not implemented; this matches the PyTorch module under .eval() with p=0.0.
    bn1 = (jax.random.uniform(kg1, (C,), jnp.float32, 0.5, 1.5),
           jax.random.normal(kb1, (C,), jnp.float32) * 0.1,
           jax.random.normal(km1, (C,), jnp.float32) * 0.1,
           jax.random.uniform(kv1, (C,), jnp.float32, 0.5, 1.5))
    bn2 = (jax.random.uniform(kg2, (C,), jnp.float32, 0.5, 1.5),
           jax.random.normal(kb2, (C,), jnp.float32) * 0.1,
           jax.random.normal(km2, (C,), jnp.float32) * 0.1,
           jax.random.uniform(kv2, (C,), jnp.float32, 0.5, 1.5))

    out = jax.block_until_ready(basic_block_forward(x, w1, bn1, w2, bn2))
    ref = jax.block_until_ready(ref_basic_block(x, w1, bn1, w2, bn2))

    # bf16-operand matmuls (f32 accumulation) on both sides; tolerance covers
    # accumulation-order differences.
    np.testing.assert_allclose(np.asarray(out), np.asarray(ref), rtol=2e-2, atol=2e-2)

    print("KERNEL_OK")
</pallas_src>

<mosaic_0001>
module attributes {stable_mosaic.version = 11 : i64} {
  func.func @_basic_block_kernel(%arg0: i32, %arg1: memref<8x16x128xf32, #tpu.memory_space<vmem>>, %arg2: memref<384x128xbf16, #tpu.memory_space<vmem>>, %arg3: memref<1x128xf32, #tpu.memory_space<vmem>>, %arg4: memref<384x128xbf16, #tpu.memory_space<vmem>>, %arg5: memref<1x128xf32, #tpu.memory_space<vmem>>, %arg6: memref<8x16x128xf32, #tpu.memory_space<vmem>>, %arg7: memref<8x32x128xf32, #tpu.memory_space<vmem>>) attributes {dimension_semantics = [#tpu.dimension_semantics<parallel>], iteration_bounds = array<i64: 2>, scalar_prefetch = 0 : i64, scratch_operands = 1 : i64, tpu.core_type = #tpu.core_type<tc>, window_params = [{transform_indices = @transform_0, window_bounds = array<i64: 8, 16, 128>}, {pipeline_mode = #tpu.pipeline_mode<synchronous>, transform_indices = @transform_1, window_bounds = array<i64: 384, 128>}, {pipeline_mode = #tpu.pipeline_mode<synchronous>, transform_indices = @transform_2, window_bounds = array<i64: 1, 128>}, {pipeline_mode = #tpu.pipeline_mode<synchronous>, transform_indices = @transform_3, window_bounds = array<i64: 384, 128>}, {pipeline_mode = #tpu.pipeline_mode<synchronous>, transform_indices = @transform_4, window_bounds = array<i64: 1, 128>}, {transform_indices = @transform_5, window_bounds = array<i64: 8, 16, 128>}]} {
    %cst = arith.constant 0.000000e+00 : f32
    %0 = vector.broadcast %cst : f32 to vector<8x8x128xf32>
    %c0 = arith.constant 0 : index
    %c0_0 = arith.constant 0 : index
    %c0_1 = arith.constant 0 : index
    %1 = vector.load %arg7[%c0, %c0_0, %c0_1] : memref<8x32x128xf32, #tpu.memory_space<vmem>>, vector<8x8x128xf32>
    tpu.vector_store %arg7[%c0, %c0_0, %c0_1], %0 {strides = array<i32>} : memref<8x32x128xf32, #tpu.memory_space<vmem>>, vector<8x8x128xf32>,
    %cst_2 = arith.constant 0.000000e+00 : f32
    %2 = vector.broadcast %cst_2 : f32 to vector<8x8x128xf32>
    %c0_3 = arith.constant 0 : index
    %c24 = arith.constant 24 : index
    %c0_4 = arith.constant 0 : index
    %3 = vector.load %arg7[%c0_3, %c24, %c0_4] : memref<8x32x128xf32, #tpu.memory_space<vmem>>, vector<8x8x128xf32>
    tpu.vector_store %arg7[%c0_3, %c24, %c0_4], %2 {strides = array<i32>} : memref<8x32x128xf32, #tpu.memory_space<vmem>>, vector<8x8x128xf32>,
    %c0_5 = arith.constant 0 : index
    %c0_6 = arith.constant 0 : index
    %c0_7 = arith.constant 0 : index
    %4 = vector.load %arg1[%c0_5, %c0_6, %c0_7] : memref<8x16x128xf32, #tpu.memory_space<vmem>>, vector<8x16x128xf32>
    %c0_8 = arith.constant 0 : index
    %c8 = arith.constant 8 : index
    %c0_9 = arith.constant 0 : index
    %5 = vector.load %arg7[%c0_8, %c8, %c0_9] : memref<8x32x128xf32, #tpu.memory_space<vmem>>, vector<8x16x128xf32>
    tpu.vector_store %arg7[%c0_8, %c8, %c0_9], %4 {strides = array<i32>} : memref<8x32x128xf32, #tpu.memory_space<vmem>>, vector<8x16x128xf32>,
    %c0_10 = arith.constant 0 : index
    %c7 = arith.constant 7 : index
    %c0_11 = arith.constant 0 : index
    %6 = vector.load %arg7[%c0_10, %c7, %c0_11] : memref<8x32x128xf32, #tpu.memory_space<vmem>>, vector<8x16x128xf32>
    %7 = vector.shape_cast %6 : vector<8x16x128xf32> to vector<128x128xf32>
    %c0_12 = arith.constant 0 : index
    %c8_13 = arith.constant 8 : index
    %c0_14 = arith.constant 0 : index
    %8 = vector.load %arg7[%c0_12, %c8_13, %c0_14] : memref<8x32x128xf32, #tpu.memory_space<vmem>>, vector<8x16x128xf32>
    %9 = vector.shape_cast %8 : vector<8x16x128xf32> to vector<128x128xf32>
    %c0_15 = arith.constant 0 : index
    %c9 = arith.constant 9 : index
    %c0_16 = arith.constant 0 : index
    %10 = vector.load %arg7[%c0_15, %c9, %c0_16] : memref<8x32x128xf32, #tpu.memory_space<vmem>>, vector<8x16x128xf32>
    %11 = vector.shape_cast %10 : vector<8x16x128xf32> to vector<128x128xf32>
    %12 = tpu.concatenate %7, %9, %11 in 1 : vector<128x128xf32>, vector<128x128xf32>, vector<128x128xf32> -> vector<128x384xf32>
    %13 = arith.truncf %12 : vector<128x384xf32> to vector<128x384xbf16>
    %c0_17 = arith.constant 0 : index
    %c0_18 = arith.constant 0 : index
    %14 = vector.load %arg2[%c0_17, %c0_18] : memref<384x128xbf16, #tpu.memory_space<vmem>>, vector<384x128xbf16>
    %cst_19 = arith.constant dense<0.000000e+00> : vector<128x128xf32>
    %15 = tpu.matmul %13, %14, %cst_19 {dimension_numbers = #tpu.dot_dimension_numbers<[1], [0], [0], [1], [0, 0, 1, 1], [], []>} : vector<128x384xbf16>, vector<384x128xbf16>, vector<128x128xf32> -> vector<128x128xf32>
    %c0_20 = arith.constant 0 : index
    %c0_21 = arith.constant 0 : index
    %16 = vector.load %arg3[%c0_20, %c0_21] : memref<1x128xf32, #tpu.memory_space<vmem>>, vector<1x128xf32>
    %17 = vector.broadcast %16 : vector<1x128xf32> to vector<128x128xf32>
    %18 = arith.addf %15, %17 : vector<128x128xf32>
    %cst_22 = arith.constant 0.000000e+00 : f32
    %19 = vector.broadcast %cst_22 : f32 to vector<128x128xf32>
    %20 = arith.maximumf %18, %19 : vector<128x128xf32>
    %21 = vector.shape_cast %20 : vector<128x128xf32> to vector<8x16x128xf32>
    %c0_23 = arith.constant 0 : index
    %c8_24 = arith.constant 8 : index
    %c0_25 = arith.constant 0 : index
    %22 = vector.load %arg7[%c0_23, %c8_24, %c0_25] : memref<8x32x128xf32, #tpu.memory_space<vmem>>, vector<8x16x128xf32>
    tpu.vector_store %arg7[%c0_23, %c8_24, %c0_25], %21 {strides = array<i32>} : memref<8x32x128xf32, #tpu.memory_space<vmem>>, vector<8x16x128xf32>,
    %c0_26 = arith.constant 0 : index
    %c7_27 = arith.constant 7 : index
    %c0_28 = arith.constant 0 : index
    %23 = vector.load %arg7[%c0_26, %c7_27, %c0_28] : memref<8x32x128xf32, #tpu.memory_space<vmem>>, vector<8x16x128xf32>
    %24 = vector.shape_cast %23 : vector<8x16x128xf32> to vector<128x128xf32>
    %c0_29 = arith.constant 0 : index
    %c8_30 = arith.constant 8 : index
    %c0_31 = arith.constant 0 : index
    %25 = vector.load %arg7[%c0_29, %c8_30, %c0_31] : memref<8x32x128xf32, #tpu.memory_space<vmem>>, vector<8x16x128xf32>
    %26 = vector.shape_cast %25 : vector<8x16x128xf32> to vector<128x128xf32>
    %c0_32 = arith.constant 0 : index
    %c9_33 = arith.constant 9 : index
    %c0_34 = arith.constant 0 : index
    %27 = vector.load %arg7[%c0_32, %c9_33, %c0_34] : memref<8x32x128xf32, #tpu.memory_space<vmem>>, vector<8x16x128xf32>
    %28 = vector.shape_cast %27 : vector<8x16x128xf32> to vector<128x128xf32>
    %29 = tpu.concatenate %24, %26, %28 in 1 : vector<128x128xf32>, vector<128x128xf32>, vector<128x128xf32> -> vector<128x384xf32>
    %30 = arith.truncf %29 : vector<128x384xf32> to vector<128x384xbf16>
    %c0_35 = arith.constant 0 : index
    %c0_36 = arith.constant 0 : index
    %31 = vector.load %arg4[%c0_35, %c0_36] : memref<384x128xbf16, #tpu.memory_space<vmem>>, vector<384x128xbf16>
    %cst_37 = arith.constant dense<0.000000e+00> : vector<128x128xf32>
    %32 = tpu.matmul %30, %31, %cst_37 {dimension_numbers = #tpu.dot_dimension_numbers<[1], [0], [0], [1], [0, 0, 1, 1], [], []>} : vector<128x384xbf16>, vector<384x128xbf16>, vector<128x128xf32> -> vector<128x128xf32>
    %c0_38 = arith.constant 0 : index
    %c0_39 = arith.constant 0 : index
    %c0_40 = arith.constant 0 : index
    %33 = vector.load %arg1[%c0_38, %c0_39, %c0_40] : memref<8x16x128xf32, #tpu.memory_space<vmem>>, vector<8x16x128xf32>
    %34 = vector.shape_cast %33 : vector<8x16x128xf32> to vector<128x128xf32>
    %c0_41 = arith.constant 0 : index
    %c0_42 = arith.constant 0 : index
    %35 = vector.load %arg5[%c0_41, %c0_42] : memref<1x128xf32, #tpu.memory_space<vmem>>, vector<1x128xf32>
    %36 = vector.broadcast %35 : vector<1x128xf32> to vector<128x128xf32>
    %37 = arith.addf %32, %36 : vector<128x128xf32>
    %38 = arith.addf %37, %34 : vector<128x128xf32>
    %cst_43 = arith.constant 0.000000e+00 : f32
    %39 = vector.broadcast %cst_43 : f32 to vector<128x128xf32>
    %40 = arith.maximumf %38, %39 : vector<128x128xf32>
    %41 = vector.shape_cast %40 : vector<128x128xf32> to vector<8x16x128xf32>
    %c0_44 = arith.constant 0 : index
    %c0_45 = arith.constant 0 : index
    %c0_46 = arith.constant 0 : index
    %42 = vector.load %arg6[%c0_44, %c0_45, %c0_46] : memref<8x16x128xf32, #tpu.memory_space<vmem>>, vector<8x16x128xf32>
    tpu.vector_store %arg6[%c0_44, %c0_45, %c0_46], %41 {strides = array<i32>} : memref<8x16x128xf32, #tpu.memory_space<vmem>>, vector<8x16x128xf32>,
    return
  }
  func.func @transform_0(%arg0: i32) -> (i32, i32, i32) {
    %c0_i32 = arith.constant 0 : i32
    %c0_i32_0 = arith.constant 0 : i32
    %c0_i32_1 = arith.constant 0 : i32
    return %arg0, %c0_i32, %c0_i32_0 : i32, i32, i32
  }
  func.func @transform_1(%arg0: i32) -> (i32, i32) {
    %c0_i32 = arith.constant 0 : i32
    %c0_i32_0 = arith.constant 0 : i32
    %c0_i32_1 = arith.constant 0 : i32
    return %c0_i32, %c0_i32_0 : i32, i32
  }
  func.func @transform_2(%arg0: i32) -> (i32, i32) {
    %c0_i32 = arith.constant 0 : i32
    %c0_i32_0 = arith.constant 0 : i32
    %c0_i32_1 = arith.constant 0 : i32
    return %c0_i32, %c0_i32_0 : i32, i32
  }
  func.func @transform_3(%arg0: i32) -> (i32, i32) {
    %c0_i32 = arith.constant 0 : i32
    %c0_i32_0 = arith.constant 0 : i32
    %c0_i32_1 = arith.constant 0 : i32
    return %c0_i32, %c0_i32_0 : i32, i32
  }
  func.func @transform_4(%arg0: i32) -> (i32, i32) {
    %c0_i32 = arith.constant 0 : i32
    %c0_i32_0 = arith.constant 0 : i32
    %c0_i32_1 = arith.constant 0 : i32
    return %c0_i32, %c0_i32_0 : i32, i32
  }
  func.func @transform_5(%arg0: i32) -> (i32, i32, i32) {
    %c0_i32 = arith.constant 0 : i32
    %c0_i32_0 = arith.constant 0 : i32
    %c0_i32_1 = arith.constant 0 : i32
    return %arg0, %c0_i32, %c0_i32_0 : i32, i32, i32
  }
}

</mosaic_0001>

<bundles_post_ra>
// kernel: tpu_custom_call.1
= control target key start
LH: loop header
LB: loop body
LE: loop exit
PB: predicated region body
PF: predicated region fallthrough
CT: control target
= control target key end

     0   :  { %10 = vsyncpa [#allocation4], 0  ;;  %s2497_s0 = inlined_call_operand.hbm [shape: f32[16,16,128], index: 0, kind: input, shape index: {}]   ;;  %s2498_s1 = inlined_call_operand.hbm [shape: bf16[384,128], index: 1, kind: input, shape index: {}]   ;;  %s2499_s2 = inlined_call_operand.vmem [shape: f32[1,128], index: 2, kind: input, shape index: {}]   ;;  %s2500_s3 = inlined_call_operand.hbm [shape: bf16[384,128], index: 3, kind: input, shape index: {}]   ;;  %s2501_s4 = inlined_call_operand.vmem [shape: f32[1,128], index: 4, kind: input, shape index: {}]   ;;  %s2502_s5 = inlined_call_operand.hbm [shape: f32[16,16,128], index: 5, kind: output, shape index: {}]  }
   0x1   :  { %12 = vsyncpa [#allocation4 + $0x1], 0 }
   0x2   :  { %13 = vsyncpa [#allocation7], 0 }
   0x3   :  { %14 = vsyncpa [#allocation5], 0 }
   0x4   :  { %16 = vsyncpa [#allocation5 + $0x1], 0  ;;  %s2076_s18 = smov 0   ;;  %s2078_s19 = smov 0  }
   0x5   :  { %s2080_s20 = smov 0   ;;  %s2082_s21 = smov 0  }
   0x6 LB: > { %s2097_s22 = sadd.s32 4294967295, %s2033_s21   ;;  %s1457_s23 = sadd.s32 4294967294, %s2033_s21   ;;  %s2033_s21 = sphi %s2082_s21, %s2522_s21   ;;  %s2029_s20 = sphi %s2080_s20, %s2521_s20   ;;  %s2025_s19 = sphi %s2078_s19, %s2520_s19   ;;  %s2021_s18 = sphi %s2076_s18, %s2519_s18  }
   0x7   : > { %p42_p0 = scmp.ne.s32.totalorder %s2025_s19, %s2021_s18  ;;  %p2503_p1 = scmp.eq.s32.totalorder %s2097_s22, 0 }
   0x8   : > { %p156_p3 = scmp.eq.s32.totalorder %s1457_s23, 1  ;;  %p1458_p5 = scmp.ge.s32.totalorder %s2033_s21, 1 }
   0x9   : > { %p2106_p4 = por %p2503_p1, %p42_p0  ;;  %p163_p7 = scmp.lt.s32.totalorder %s2033_s21, 3 }
   0xa   : > { %p2111_p6 = por %p156_p3, %p42_p0  ;;  %s2035_s27 = smov [#allocation6]  }
   0xb   : > { %s2506_s24 = scalar_select %p2106_p4, 1, 0 }
   0xc   : > { %s2507_s25 = scalar_select %p2111_p6, 1, 0 }
   0xd   : > { %p2116_p8 = pnand %p1458_p5, %p163_p7  ;;  %s175_s28 = sshll.u32 %s2035_s27, 4  ;;  %s2120_s28 = int_to_ptr.vmem [resolvable:$true] %s175_s28 }
   0xe   : > { %s2036_s30 = smov [#allocation8]   ;;  %s1877_s9 = scalar_lea.hbm %s2498_s1, 3072 }
   0xf   : > { %p1767_p9 = pneg %p2116_p8  ;;  %s191_s6 = sshll.u32 %s2036_s30, 4  ;;  %s2131_s6 = int_to_ptr.vmem [resolvable:$true] %s191_s6 }
  0x10   : > { %p1878_p12 = scmp.ne.s32.totalorder %s2498_s1, %s1877_s9  ;;  %p1884_p5 = scmp.lt.u32.totalorder %s1877_s9, %s2498_s1 }
  0x11   : > { %p2127_p11 = pnand %p1767_p9, %p2503_p1 }
  0x13   : > { %p1879_p13 = pneg %p2127_p11 }
  0x15   : > { %p1880_p0 = pnand %p1879_p13, %p1878_p12 }
  0x17   : > { %p1881_p3 = pneg %p1880_p0 }
  0x19   : > { %p1886_p7 = pnand %p1884_p5, %p1881_p3 }
  0x1b   : > { %1889 = shalt.err (!%p1886_p7)
}
  0x1c   : > { %s1890_s14 = scalar_lea.vmem %s2120_s28, 3072  ;;  %p1898_p2 = scmp.lt.s32.totalorder %s2120_s28, %s2120_s28 }
  0x1d   : > { %p1891_p9 = scmp.ne.s32.totalorder %s2120_s28, %s1890_s14  ;;  %p1899_p12 = scmp.lt.s32.totalorder %s1890_s14, %s1890_s14 }
  0x1f   : > { %p1893_p10 = pnand %p1891_p9, %p1879_p13  ;;  %p1900_p0 = por %p1899_p12, %p1898_p2 }
  0x21   : > { %p1894_p1 = pneg %p1893_p10 }
  0x23   : > { %p1901_p6 = pnand %p1900_p0, %p1894_p1 }
  0x25   : > { %1904 = shalt.err (!%p1901_p6)
}
  0x26   : > { %s2037_s15 = smov 64   ;;  %s2038_s16 = smov 4  }
  0x27   : > { %1770 = dma.hbm_to_vmem [thread:$0]  (!%p2127_p11), %s2498_s1, 3072, %s2120_s28, [#allocation7], %s2037_s15, %s2037_s15, %s2038_s16  }
  0x28   : > { %s1905_s7 = scalar_lea.hbm %s2500_s3, 3072 }
  0x29   : > { %p1906_p2 = scmp.ne.s32.totalorder %s2500_s3, %s1905_s7  ;;  %p1912_p10 = scmp.lt.u32.totalorder %s1905_s7, %s2500_s3 }
  0x2b   : > { %p1908_p1 = pnand %p1906_p2, %p1879_p13 }
  0x2d   : > { %p1909_p6 = pneg %p1908_p1 }
  0x2f   : > { %p1914_p3 = pnand %p1912_p10, %p1909_p6 }
  0x31   : > { %1917 = shalt.err (!%p1914_p3)
}
  0x32   : > { %s1918_s28 = scalar_lea.vmem %s2131_s6, 3072  ;;  %p1926_p12 = scmp.lt.s32.totalorder %s2131_s6, %s2131_s6 }
  0x33   : > { %p1919_p5 = scmp.ne.s32.totalorder %s2131_s6, %s1918_s28  ;;  %p1927_p0 = scmp.lt.s32.totalorder %s1918_s28, %s1918_s28 }
  0x35   : > { %p1921_p7 = pnand %p1919_p5, %p1879_p13  ;;  %p1928_p2 = por %p1927_p0, %p1926_p12 }
  0x37   : > { %p1922_p9 = pneg %p1921_p7 }
  0x39   : > { %p1929_p1 = pnand %p1928_p2, %p1922_p9 }
  0x3b   : > { %1932 = shalt.err (!%p1929_p1)
}
  0x3c   : > { %1773 = dma.hbm_to_vmem [thread:$0]  (!%p2127_p11), %s2500_s3, 3072, %s2131_s6, [#allocation7], %s2037_s15, %s2037_s15, %s2038_s16  }
  0x3d   : > { %s2186_s14 = sadd.s32 1, %s2033_s21   ;;  %s29_s29 = sadd.s32 1, %s2029_s20 }
  0x3e   : > { %s26_s17 = ssub.s32 %s2033_s21, %s2186_s14  ;;  %p36_p13 = scmp.ne.s32.totalorder %s2029_s20, %s2025_s19 }
  0x3f   : > { %p27_p6 = scmp.eq.s32.totalorder %s26_s17, 0  ;;  %p37_p10 = scmp.eq.s32.totalorder %s2033_s21, 0 }
  0x40   : > { %p2510_p3 = scmp.eq.s32.totalorder %s2097_s22, 1  ;;  %p1784_p7 = scmp.lt.s32.totalorder %s2033_s21, 2 }
  0x41   : > { %s2202_s27 = scalar_select %p27_p6, %s2029_s20, %s29_s29  }
  0x42   : > { %p2196_p5 = por %p2510_p3, %p36_p13  ;;  %p38_p9 = por %p37_p10, %p36_p13 }
  0x43   : > { %s208_s30 = sand.u32 1, %s2029_s20   ;;  %s1528_s6 = sshll.u32 %s2033_s21, 11 }
  0x44   : > { %s2511_s23 = scalar_select %p2196_p5, 1, 0 }
  0x45   : > { %s1462_s7 = sshll.u32 %s208_s30, 7  ;;  %s2209_s8 = scalar_lea.hbm %s2497_s0, %s1528_s6 }
  0x46   : > { %s212_s9 = scalar_lea.vmem [#allocation3], %s1462_s7  ;;  %p2213_p11 = pnand %p1784_p7, %p38_p9 }
  0x47   : > { %s220_s10 = sshll.u32 %s212_s9, 4  ;;  %s2217_s28 = scalar_lea.sflag [#allocation4], %s208_s30  ;;  %s2211_s10 = int_to_ptr.vmem [resolvable:$true] %s220_s10 }
  0x48   : > { %s1933_s12 = scalar_lea.hbm %s2209_s8, 2048  ;;  %p1935_p0 = pneg %p2213_p11 }
  0x49   : > { %p1934_p12 = scmp.ne.s32.totalorder %s2209_s8, %s1933_s12  ;;  %s1938_s17 = scalar_lea.hbm %s2497_s0, 4096 }
  0x4a   : > { %p1939_p13 = scmp.lt.u32.totalorder %s2209_s8, %s2497_s0  ;;  %p1940_p6 = scmp.lt.u32.totalorder %s1938_s17, %s1933_s12 }
  0x4b   : > { %p1936_p2 = pnand %p1935_p0, %p1934_p12  ;;  %p1942_p3 = scmp.lt.u32.totalorder %s1933_s12, %s2209_s8 }
  0x4c   : > { %p1941_p10 = por %p1940_p6, %p1939_p13 }
  0x4d   : > { %p1937_p1 = pneg %p1936_p2 }
  0x4e   : > { %p1943_p7 = por %p1942_p3, %p1941_p10 }
  0x50   : > { %p1944_p9 = pnand %p1943_p7, %p1937_p1 }
  0x52   : > { %1947 = shalt.err (!%p1944_p9)
}
  0x53   : > { %s1948_s30 = scalar_lea.vmem %s2211_s10, 2048  ;;  %s2039_s15 = smov [#allocation3]  }
  0x54   : > { %p1949_p12 = scmp.ne.s32.totalorder %s2211_s10, %s1948_s30  ;;  %s1953_s16 = sshll.u32 %s2039_s15, 4  ;;  %s1954_s16 = int_to_ptr.vmem [resolvable:$false] %s1953_s16 }
  0x55   : > { %s1955_s9 = scalar_lea.vmem %s1954_s16, 4096  ;;  %p1956_p4 = scmp.lt.s32.totalorder %s2211_s10, %s1954_s16 }
  0x56   : > { %p1951_p2 = pnand %p1949_p12, %p1935_p0  ;;  %p1957_p13 = scmp.lt.s32.totalorder %s1955_s9, %s1948_s30 }
  0x58   : > { %p1952_p5 = pneg %p1951_p2  ;;  %p1958_p6 = por %p1957_p13, %p1956_p4 }
  0x5a   : > { %p1959_p10 = pnand %p1958_p6, %p1952_p5 }
  0x5c   : > { %1962 = shalt.err (!%p1959_p10)
}
  0x5d   : > { %s2040_s12 = smov 128   ;;  %s2041_s13 = smov 8  }
  0x5e   : > { %1777 = dma.hbm_to_vmem [thread:$0]  (!%p2213_p11), %s2209_s8, 2048, %s2211_s10, %s2217_s28, %s2040_s12, %s2040_s12, %s2041_s13  }
  0x5f   : > { %232 = sbr.rel (%p2116_p8) target bundleno = 669 (0x29d), region = 40  ;;  %s2248_s29 = sand.u32 (!%p2116_p8), 1, %s2025_s19  }
  0x60   : > { %s1467_s17 = sshll.u32 (!%p2116_p8), %s2248_s29, 7  ;;  %s235_s7 = scalar_lea.sflag (!%p2116_p8), [#allocation4], %s2248_s29 }
  0x61   : > { %s2254_s6 = scalar_lea.vmem (!%p2116_p8), [#allocation3], %s1467_s17  ;;  %p2513_p4 = scmp.ne.s32.totalorder (!%p2116_p8), %s2506_s24, 0 }
  0x66   : > { %2008 = dma.done.wait (%p2513_p4), %s235_s7, 2048  }
  0x67   : > { %2010 = vsyncadd (%p2513_p4), %s235_s7, 4294965248  ;;  %p2514_p5 = scmp.eq.s32.totalorder %s2097_s22, 0 }
  0x69   : > { %2012 = dma.done.wait (%p2514_p5), [#allocation7], 6144   ;;  %p2515_p8 = pmov %p2514_p5 }
  0x6a   : > { %v2042_v0 = vmov 0.0   ;;  %v1829_v1 = vld [vmem:[#allocation6 + $0x40] sm:$0xff]   ;;  %v1832_v4 = vld [vmem:[#allocation6 + $0x48] sm:$0xff]   ;;  %v1835_v7 = vld [vmem:[#allocation6 + $0x50] sm:$0xff]   ;;  %s2402_s11 = scalar_lea.vmem [#allocation9], %s1467_s17  ;;  %s1530_s28 = sshll.u32 %s2097_s22, 11 }
  0x6b   : > { %2014 = vsyncadd (%p2515_p8), [#allocation7], 4294961152  ;;  %276 = vst [vmem:[#allocation2] sm:$0xff] %v2042_v0  ;;  %v1830_v2 = vld [vmem:[#allocation6] sm:$0xff]   ;;  %1531 = vmatprep.subr.bf16.mxu0 %v1829_v1  ;;  %v1833_v5 = vld [vmem:[#allocation6 + $0x8] sm:$0xff]   ;;  %s1365_s30 = sshll.u32 %s2402_s11, 4  ;;  %s2449_s9 = scalar_lea.hbm %s2502_s5, %s1530_s28  ;;  %s2451_s30 = int_to_ptr.vmem [resolvable:$true] %s1365_s30 }
  0x6c   : > { %277 = vst [vmem:[#allocation2 + $0x20] sm:$0xff] %v2042_v0  ;;  %278 = vst [vmem:[#allocation2 + $0x40] sm:$0xff] %v2042_v0  ;;  %v1831_v3 = vld [vmem:[#allocation6 + $0x80] sm:$0xff]   ;;  %1532 = vmatpush3.bf16.msra.mxu0 %v1830_v2  ;;  %v1834_v6 = vld [vmem:[#allocation6 + $0x88] sm:$0xff]   ;;  %s1351_s12 = scalar_lea.sflag [#allocation5], %s2248_s29  ;;  %s1963_s22 = scalar_lea.vmem %s2451_s30, 2048 }
  0x6d   : > { %279 = vst [vmem:[#allocation2 + $0x60] sm:$0xff] %v2042_v0  ;;  %280 = vst [vmem:[#allocation2 + $0x80] sm:$0xff] %v2042_v0  ;;  %1691 = vmatprep.subr.bf16.mxu1 %v1831_v3  ;;  %1533 = vmatprep.subr.bf16.mxu0 %v1832_v4  ;;  %v1836_v8 = vld [vmem:[#allocation6 + $0x10] sm:$0xff]   ;;  %v1838_v10 = vld [vmem:[#allocation6 + $0x58] sm:$0xff]   ;;  %p1964_p11 = scmp.ne.s32.totalorder %s2451_s30, %s1963_s22  ;;  %p2516_p0 = scmp.ne.s32.totalorder %s2511_s23, 0 }
  0x6e   : > { %281 = vst [vmem:[#allocation2 + $0xa0] sm:$0xff] %v2042_v0  ;;  %282 = vst [vmem:[#allocation2 + $0xc0] sm:$0xff] %v2042_v0  ;;  %1692 = vmatpush3.bf16.msra.mxu1 %v1831_v3  ;;  %v1837_v9 = vld [vmem:[#allocation6 + $0x90] sm:$0xff]   ;;  %v1839_v11 = vld [vmem:[#allocation6 + $0x18] sm:$0xff]   ;;  %s2043_s13 = smov [#allocation9]  }
  0x6f   : > { %283 = vst [vmem:[#allocation2 + $0xe0] sm:$0xff] %v2042_v0  ;;  %284 = vst [vmem:[#allocation2 + $0x18] sm:$0xff] %v2042_v0  ;;  %1693 = vmatprep.subr.bf16.mxu1 %v1834_v6  ;;  %v1840_v12 = vld [vmem:[#allocation6 + $0x98] sm:$0xff]   ;;  %v1841_v13 = vld [vmem:[#allocation6 + $0x60] sm:$0xff]   ;;  %p1965_p1 = pnand %p1964_p11, %p2516_p0  ;;  %s1967_s17 = sshll.u32 %s2043_s13, 4  ;;  %s1968_s17 = int_to_ptr.vmem [resolvable:$false] %s1967_s17 }
  0x70   : > { %285 = vst [vmem:[#allocation2 + $0x38] sm:$0xff] %v2042_v0  ;;  %286 = vst [vmem:[#allocation2 + $0x58] sm:$0xff] %v2042_v0  ;;  %1534 = vmatpush3.bf16.msra.mxu0 %v1833_v5  ;;  %v1843_v14 = vld [vmem:[#allocation6 + $0xa0] sm:$0xff]   ;;  %v1844_v16 = vld [vmem:[#allocation6 + $0x68] sm:$0xff]   ;;  %s1969_s7 = scalar_lea.vmem %s1968_s17, 4096  ;;  %p1970_p7 = scmp.lt.s32.totalorder %s2451_s30, %s1968_s17 }
  0x71   : > { %287 = vst [vmem:[#allocation2 + $0x78] sm:$0xff] %v2042_v0  ;;  %288 = vst [vmem:[#allocation2 + $0x98] sm:$0xff] %v2042_v0  ;;  %1535 = vmatprep.subr.bf16.mxu0 %v1835_v7  ;;  %v1842_v15 = vld [vmem:[#allocation6 + $0x20] sm:$0xff]   ;;  %v1846_v17 = vld [vmem:[#allocation6 + $0xa8] sm:$0xff]   ;;  %p1966_p3 = pneg %p1965_p1  ;;  %p1971_p9 = scmp.lt.s32.totalorder %s1969_s7, %s1963_s22 }
  0x72   : > { %289 = vst [vmem:[#allocation2 + $0xb8] sm:$0xff] %v2042_v0  ;;  %290 = vst [vmem:[#allocation2 + $0xd8] sm:$0xff] %v2042_v0  ;;  %1694 = vmatpush3.bf16.msra.mxu1 %v1834_v6  ;;  %v1845_v18 = vld [vmem:[#allocation6 + $0x28] sm:$0xff]   ;;  %v1847_v19 = vld [vmem:[#allocation6 + $0x70] sm:$0xff]  }
  0x73   : > { %291 = vst [vmem:[#allocation2 + $0xf8] sm:$0xff] %v2042_v0  ;;  %1695 = vmatprep.subr.bf16.mxu1 %v1837_v9  ;;  %v1848_v20 = vld [vmem:[#allocation6 + $0x30] sm:$0xff]   ;;  %v1850_v22 = vld [vmem:[#allocation6 + $0x78] sm:$0xff]   ;;  %v2265_v24 = vld [vmem:[%s2254_s6] sm:$0xff]  ;;  %p1972_p12 = por %p1971_p9, %p1970_p7 }
  0x74   : > { %1536 = vmatpush3.bf16.msra.mxu0 %v1836_v8  ;;  %v1849_v21 = vld [vmem:[#allocation6 + $0xb0] sm:$0xff]   ;;  %v1852_v23 = vld [vmem:[#allocation6 + $0xb8] sm:$0xff]   ;;  %v2268_v25 = vld [vmem:[%s2254_s6 + $0x8] sm:$0xff]  ;;  %308 = vst [vmem:[#allocation2 + $0x8] sm:$0xff] %v2265_v24 }
  0x75   : > { %1537 = vmatprep.subr.bf16.mxu0 %v1838_v10  ;;  %v2271_v26 = vld [vmem:[%s2254_s6 + $0x10] sm:$0xff]  ;;  %v1851_v27 = vld [vmem:[#allocation6 + $0x38] sm:$0xff]   ;;  %309 = vst [vmem:[#allocation2 + $0x10] sm:$0xff] %v2268_v25  ;;  %v373_v28 = vpack.c.bf16 %v2268_v25, %v2265_v24  ;;  %v2282_v30 = vld [vmem:[%s2254_s6 + $0x20] sm:$0xff]  ;;  %p1973_p2 = pnand %p1972_p12, %p1966_p3 }
  0x76   : > { %1696 = vmatpush3.bf16.msra.mxu1 %v1837_v9  ;;  %v2278_v29 = vld [vmem:[%s2254_s6 + $0x18] sm:$0xff]  ;;  %310 = vst [vmem:[#allocation2 + $0x28] sm:$0xff] %v2271_v26  ;;  %v2285_v31 = vld [vmem:[%s2254_s6 + $0x28] sm:$0xff]  ;;  %312 = vst [vmem:[#allocation2 + $0x48] sm:$0xff] %v2282_v30 }
  0x77   : > { %1697 = vmatprep.subr.bf16.mxu1 %v1840_v12  ;;  %311 = vst [vmem:[#allocation2 + $0x30] sm:$0xff] %v2278_v29  ;;  %313 = vst [vmem:[#allocation2 + $0x50] sm:$0xff] %v2285_v31  ;;  %v2291_v32 = vld [vmem:[%s2254_s6 + $0x30] sm:$0xff]  ;;  %v2294_v33 = vld [vmem:[%s2254_s6 + $0x38] sm:$0xff]  ;;  %627 = vmatprep.mubr.bf16.mxu0 %v373_v28  ;;  %v376_v46 = vpack.c.bf16 %v2278_v29, %v2271_v26  ;;  %v379_v0 = vpack.c.bf16 %v2285_v31, %v2282_v30 }
  0x78   : > { %1538 = vmatpush3.bf16.msra.mxu0 %v1839_v11  ;;  %v2297_v34 = vld [vmem:[%s2254_s6 + $0x40] sm:$0xff]  ;;  %314 = vst [vmem:[#allocation2 + $0x68] sm:$0xff] %v2291_v32  ;;  %315 = vst [vmem:[#allocation2 + $0x70] sm:$0xff] %v2294_v33  ;;  %v2302_v35 = vld [vmem:[%s2254_s6 + $0x48] sm:$0xff] }
  0x79   : > { %1539 = vmatprep.subr.bf16.mxu0 %v1841_v13  ;;  %316 = vst [vmem:[#allocation2 + $0x88] sm:$0xff] %v2297_v34  ;;  %v2306_v36 = vld [vmem:[%s2254_s6 + $0x50] sm:$0xff]  ;;  %v2309_v37 = vld [vmem:[%s2254_s6 + $0x58] sm:$0xff]  ;;  %317 = vst [vmem:[#allocation2 + $0x90] sm:$0xff] %v2302_v35 }
  0x7a   : > { %1698 = vmatpush3.bf16.msra.mxu1 %v1840_v12  ;;  %318 = vst [vmem:[#allocation2 + $0xa8] sm:$0xff] %v2306_v36  ;;  %319 = vst [vmem:[#allocation2 + $0xb0] sm:$0xff] %v2309_v37  ;;  %v2315_v38 = vld [vmem:[%s2254_s6 + $0x60] sm:$0xff]  ;;  %v2318_v39 = vld [vmem:[%s2254_s6 + $0x68] sm:$0xff] }
  0x7b   : > { %1699 = vmatprep.subr.bf16.mxu1 %v1843_v14  ;;  %v2321_v40 = vld [vmem:[%s2254_s6 + $0x70] sm:$0xff]  ;;  %320 = vst [vmem:[#allocation2 + $0xc8] sm:$0xff] %v2315_v38  ;;  %321 = vst [vmem:[#allocation2 + $0xd0] sm:$0xff] %v2318_v39  ;;  %v2326_v41 = vld [vmem:[%s2254_s6 + $0x78] sm:$0xff] }
  0x7c   : > { %1540 = vmatpush3.bf16.msra.mxu0 %v1842_v15  ;;  %322 = vst [vmem:[#allocation2 + $0xe8] sm:$0xff] %v2321_v40  ;;  %323 = vst [vmem:[#allocation2 + $0xf0] sm:$0xff] %v2326_v41  ;;  %v1853_v42 = vld [vmem:[#allocation8 + $0x40] sm:$0xff]   ;;  %v325_v44 = vld [vmem:[#allocation2 + $0xf] sm:$0xff]  ;;  %v382_v15 = vpack.c.bf16 %v2294_v33, %v2291_v32 }
  0x7d   : > { %1541 = vmatprep.subr.bf16.mxu0 %v1844_v16  ;;  %v324_v43 = vld [vmem:[#allocation2 + $0x7] sm:$0xff]  ;;  %v357_v48 = vld [vmem:[#allocation2 + $0x11] sm:$0xff] }
  0x7e   : > { %1700 = vmatpush3.bf16.msra.mxu1 %v1843_v14  ;;  %v356_v45 = vld [vmem:[#allocation2 + $0x9] sm:$0xff]  ;;  %v372_v47 = vpack.c.bf16 %v325_v44, %v324_v43  ;;  %v359_v50 = vld [vmem:[#allocation2 + $0x31] sm:$0xff]  ;;  %v1854_v53 = vld [vmem:[#allocation8] sm:$0xff]   ;;  %v388_v44 = vpack.c.bf16 %v2309_v37, %v2306_v36 }
  0x7f   : > { %1701 = vmatprep.subr.bf16.mxu1 %v1846_v17  ;;  %v358_v49 = vld [vmem:[#allocation2 + $0x29] sm:$0xff]  ;;  %v374_v51 = vpack.c.bf16 %v357_v48, %v356_v45  ;;  %v361_v55 = vld [vmem:[#allocation2 + $0x51] sm:$0xff]  ;;  %v1856_v6 = vld [vmem:[#allocation8 + $0x80] sm:$0xff]   ;;  %v391_v48 = vpack.c.bf16 %v2318_v39, %v2315_v38 }
  0x80   : > { %1542 = vmatpush3.bf16.msra.mxu0 %v1845_v18  ;;  %v377_v52 = vpack.c.bf16 %v359_v50, %v358_v49  ;;  %v360_v54 = vld [vmem:[#allocation2 + $0x49] sm:$0xff]  ;;  %v363_v60 = vld [vmem:[#allocation2 + $0x71] sm:$0xff] }
  0x81   : > { %1543 = vmatprep.subr.bf16.mxu0 %v1847_v19  ;;  %1707 = vmatprep.mubr.bf16.mxu1 %v374_v51  ;;  %v326_v56 = vld [vmem:[#allocation2 + $0x27] sm:$0xff]  ;;  %v327_v57 = vld [vmem:[#allocation2 + $0x2f] sm:$0xff]  ;;  %v380_v58 = vpack.c.bf16 %v361_v55, %v360_v54 }
  0x82   : > { %1702 = vmatpush3.bf16.msra.mxu1 %v1846_v17  ;;  %v362_v59 = vld [vmem:[#allocation2 + $0x69] sm:$0xff]  ;;  %v375_v61 = vpack.c.bf16 %v327_v57, %v326_v56  ;;  %v365_v63 = vld [vmem:[#allocation2 + $0x91] sm:$0xff] }
  0x83   : > { %1703 = vmatprep.subr.bf16.mxu1 %v1849_v21  ;;  %v364_v62 = vld [vmem:[#allocation2 + $0x89] sm:$0xff]  ;;  %v383_v1 = vpack.c.bf16 %v363_v60, %v362_v59  ;;  %v367_v8 = vld [vmem:[#allocation2 + $0xb1] sm:$0xff]  ;;  %v1863_v59 = vld [vmem:[#allocation8 + $0x60] sm:$0xff]  }
  0x84   : > { %1544 = vmatpush3.bf16.msra.mxu0 %v1848_v20  ;;  %v328_v2 = vld [vmem:[#allocation2 + $0x47] sm:$0xff]  ;;  %v329_v3 = vld [vmem:[#allocation2 + $0x4f] sm:$0xff]  ;;  %v386_v4 = vpack.c.bf16 %v365_v63, %v364_v62  ;;  %v1860_v56 = vld [vmem:[#allocation8 + $0x58] sm:$0xff]  }
  0x85   : > { %1545 = vmatprep.subr.bf16.mxu0 %v1850_v22  ;;  %v1855_v5 = vld [vmem:[#allocation8 + $0x48] sm:$0xff]   ;;  %v369_v11 = vld [vmem:[#allocation2 + $0xd1] sm:$0xff]  ;;  %v378_v14 = vpack.c.bf16 %v329_v3, %v328_v2  ;;  %v1870_v2 = vld [vmem:[#allocation8 + $0xa0] sm:$0xff]  }
  0x86   : > { %1704 = vmatpush3.bf16.msra.mxu1 %v1849_v21  ;;  %v366_v7 = vld [vmem:[#allocation2 + $0xa9] sm:$0xff]  ;;  %v371_v21 = vld [vmem:[#allocation2 + $0xf1] sm:$0xff] }
  0x87   : > { %1705 = vmatprep.subr.bf16.mxu1 %v1852_v23  ;;  %v1857_v9 = vld [vmem:[#allocation8 + $0x8] sm:$0xff]   ;;  %v1858_v12 = vld [vmem:[#allocation8 + $0x50] sm:$0xff]   ;;  %v389_v16 = vpack.c.bf16 %v367_v8, %v366_v7  ;;  %v1867_v63 = vld [vmem:[#allocation8 + $0x98] sm:$0xff]  }
  0x88   : > { %1546 = vmatpush3.bf16.msra.mxu0 %v1851_v27  ;;  %v368_v10 = vld [vmem:[#allocation2 + $0xc9] sm:$0xff]  ;;  %v1876_v8 = vld [vmem:[#allocation8 + $0xb8] sm:$0xff]  }
  0x89   : > { %1723 = vmatprep.subr.bf16.mxu0 %v1856_v6  ;;  %v1859_v13 = vld [vmem:[#allocation8 + $0x10] sm:$0xff]   ;;  %v330_v17 = vld [vmem:[#allocation2 + $0x67] sm:$0xff]  ;;  %v392_v19 = vpack.c.bf16 %v369_v11, %v368_v10  ;;  %v2347_v11 = vld [vmem:[%s2499_s2] ss:$0 sm:$0xff] }
  0x8a   : > { %1706 = vmatpush3.bf16.msra.mxu1 %v1852_v23  ;;  %v331_v18 = vld [vmem:[#allocation2 + $0x6f] sm:$0xff]  ;;  %v385_v23 = vpack.c.bf16 %v2302_v35, %v2297_v34  ;;  %v332_v28 = vld [vmem:[#allocation2 + $0x87] sm:$0xff] }
  0x8b   : > { %1611 = vmatprep.subr.bf16.mxu1 %v1853_v42  ;;  %628 = vmatmul.mubr.bf16.vlgmr.msra.gmra.mrb[0].mxu0 %v372_v47  ;;  %v370_v20 = vld [vmem:[#allocation2 + $0xe9] sm:$0xff]  ;;  %v381_v22 = vpack.c.bf16 %v331_v18, %v330_v17 }
  0x8c   : > { %635 = vmatprep.mubr.bf16.mxu0 %v376_v46  ;;  %1724 = vmatpush3.bf16.msra.mxu0 %v1856_v6  ;;  %v395_v27 = vpack.c.bf16 %v371_v21, %v370_v20  ;;  %v333_v42 = vld [vmem:[#allocation2 + $0x8f] sm:$0xff]  ;;  %v334_v45 = vld [vmem:[#allocation2 + $0xa7] sm:$0xff]  ;;  %v1874_v6 = vld [vmem:[#allocation8 + $0x38] sm:$0xff]  }
  0x8d   : > { %1708 = vmatmul.mubr.bf16.vlgmr.msra.gmra.mrb[0].mxu1 %v377_v52  ;;  %v384_v43 = vpack.c.bf16 %v333_v42, %v332_v28  ;;  %v335_v46 = vld [vmem:[#allocation2 + $0xaf] sm:$0xff]  ;;  %v336_v49 = vld [vmem:[#allocation2 + $0xc7] sm:$0xff]  ;;  %v394_v52 = vpack.c.bf16 %v2326_v41, %v2321_v40 }
  0x8e   : > { %1711 = vmatprep.mubr.bf16.mxu1 %v380_v58  ;;  %1612 = vmatpush3.bf16.msra.mxu1 %v1854_v53  ;;  %v387_v47 = vpack.c.bf16 %v335_v46, %v334_v45  ;;  %v337_v50 = vld [vmem:[#allocation2 + $0xcf] sm:$0xff]  ;;  %v338_v53 = vld [vmem:[#allocation2 + $0xe7] sm:$0xff]  ;;  %v1862_v58 = vld [vmem:[#allocation8 + $0x18] sm:$0xff]  }
  0x8f   : > { %1613 = vmatprep.subr.bf16.mxu1 %v1855_v5  ;;  %v390_v51 = vpack.c.bf16 %v337_v50, %v336_v49  ;;  %v339_v54 = vld [vmem:[#allocation2 + $0xef] sm:$0xff] }
  0x90   : > { %v393_v55 = vpack.c.bf16 %v339_v54, %v338_v53  ;;  %v1861_v57 = vld [vmem:[#allocation8 + $0x88] sm:$0xff]   ;;  %v1864_v60 = vld [vmem:[#allocation8 + $0x90] sm:$0xff]  }
  0x91   : > { %1725 = vmatprep.subr.bf16.mxu0 %v1861_v57  ;;  %v1866_v62 = vld [vmem:[#allocation8 + $0x68] sm:$0xff]   ;;  %v1871_v3 = vld [vmem:[#allocation8 + $0x30] sm:$0xff]  }
  0x92   : > { %1614 = vmatpush3.bf16.msra.mxu1 %v1857_v9  ;;  %1726 = vmatpush3.bf16.msra.mxu0 %v1861_v57  ;;  %v1873_v5 = vld [vmem:[#allocation8 + $0xa8] sm:$0xff]   ;;  %v1875_v7 = vld [vmem:[#allocation8 + $0xb0] sm:$0xff]  }
  0x93   : > { %636 = vmatmul.mubr.bf16.gmra.mrb[4].mxu0 %v375_v61  ;;  %1615 = vmatprep.subr.bf16.mxu1 %v1858_v12  ;;  %v1865_v61 = vld [vmem:[#allocation8 + $0x20] sm:$0xff]  }
  0x94   : > { %643 = vmatprep.mubr.bf16.mxu0 %v379_v0  ;;  %1727 = vmatprep.subr.bf16.mxu0 %v1864_v60  ;;  %v1868_v0 = vld [vmem:[#allocation8 + $0x28] sm:$0xff]  }
  0x95   : > { %1712 = vmatmul.mubr.bf16.gmra.mrb[4].mxu1 %v383_v1  ;;  %v1869_v1 = vld [vmem:[#allocation8 + $0x70] sm:$0xff]  }
  0x96   : > { %1715 = vmatprep.mubr.bf16.mxu1 %v386_v4  ;;  %1616 = vmatpush3.bf16.msra.mxu1 %v1859_v13  ;;  %v1872_v4 = vld [vmem:[#allocation8 + $0x78] sm:$0xff]  }
  0x97   : > { %1617 = vmatprep.subr.bf16.mxu1 %v1860_v56  ;;  %1728 = vmatpush3.bf16.msra.mxu0 %v1864_v60 }
  0x98   : > { %1729 = vmatprep.subr.bf16.mxu0 %v1867_v63 }
  0x9a   : > { %1618 = vmatpush3.bf16.msra.mxu1 %v1862_v58 }
  0x9b   : > { %644 = vmatmul.mubr.bf16.gmra.mrb[8].mxu0 %v378_v14  ;;  %1619 = vmatprep.subr.bf16.mxu1 %v1863_v59 }
  0x9c   : > { %651 = vmatprep.mubr.bf16.mxu0 %v382_v15  ;;  %1730 = vmatpush3.bf16.msra.mxu0 %v1867_v63 }
  0x9d   : > { %1716 = vmatmul.mubr.bf16.gmra.mrb[8].mxu1 %v389_v16  ;;  %1731 = vmatprep.subr.bf16.mxu0 %v1870_v2 }
  0x9e   : > { %1719 = vmatprep.mubr.bf16.mxu1 %v392_v19  ;;  %1620 = vmatpush3.bf16.msra.mxu1 %v1865_v61 }
  0x9f   : > { %1621 = vmatprep.subr.bf16.mxu1 %v1866_v62 }
  0xa0   : > { %1732 = vmatpush3.bf16.msra.mxu0 %v1870_v2 }
  0xa1   : > { %1733 = vmatprep.subr.bf16.mxu0 %v1873_v5 }
  0xa2   : > { %1622 = vmatpush3.bf16.msra.mxu1 %v1868_v0 }
  0xa3   : > { %652 = vmatmul.mubr.bf16.gmra.mrb[12].mxu0 %v381_v22  ;;  %1623 = vmatprep.subr.bf16.mxu1 %v1869_v1 }
  0xa4   : > { %659 = vmatprep.mubr.bf16.mxu0 %v385_v23  ;;  %1734 = vmatpush3.bf16.msra.mxu0 %v1873_v5 }
  0xa5   : > { %1720 = vmatmul.mubr.bf16.gmra.mrb[12].mxu1 %v395_v27  ;;  %1735 = vmatprep.subr.bf16.mxu0 %v1875_v7 }
  0xa6   : > { %1624 = vmatpush3.bf16.msra.mxu1 %v1871_v3 }
  0xa7   : > { %1625 = vmatprep.subr.bf16.mxu1 %v1872_v4 }
  0xa8   : > { %1736 = vmatpush3.bf16.msra.mxu0 %v1875_v7 }
  0xa9   : > { %1737 = vmatprep.subr.bf16.mxu0 %v1876_v8 }
  0xaa   : > { %1626 = vmatpush3.bf16.msra.mxu1 %v1874_v6 }
  0xab   : > { %660 = vmatmul.mubr.bf16.gmra.mrb[16].mxu0 %v384_v43 }
  0xac   : > { %667 = vmatprep.mubr.bf16.mxu0 %v388_v44  ;;  %1738 = vmatpush3.bf16.msra.mxu0 %v1876_v8 }
  0xb3   : > { %668 = vmatmul.mubr.bf16.gmra.mrb[20].mxu0 %v387_v47 }
  0xb4   : > { %675 = vmatprep.mubr.bf16.mxu0 %v391_v48 }
  0xbb   : > { %676 = vmatmul.mubr.bf16.gmra.mrb[24].mxu0 %v390_v51 }
  0xbc   : > { %683 = vmatprep.mubr.bf16.mxu0 %v394_v52 }
  0xc3   : > { %684 = vmatmul.mubr.bf16.gmra.mrb[28].mxu0 %v393_v55 }
 0x15e   : > { %v1547_v9 = vpop.f32.mrb[0].mxu0 }
 0x15f   : > { %v1548_v10 = vpop.f32.mrb[1].mxu0 }
 0x160   : > { %v1549_v12 = vadd.f32 %v1548_v10, %v1547_v9  ;;  %v1709_v13 = vpop.f32.mrb[0].mxu1  ;;  %v1550_v14 = vpop.f32.mrb[2].mxu0 }
 0x161   : > { %v726_v15 = vpop.f32.mrb[1].mxu1  ;;  %v1551_v16 = vpop.f32.mrb[3].mxu0 }
 0x162   : > { %v630_v17 = vadd.f32 %v1549_v12, %v2347_v11  ;;  %v1552_v18 = vadd.f32 %v1551_v16, %v1550_v14  ;;  %v1710_v19 = vpop.f32.mrb[2].mxu1 }
 0x163   : > { %v729_v20 = vpop.f32.mrb[3].mxu1 }
 0x164   : > { %v727_v21 = vadd.f32 %v726_v15, %v630_v17  ;;  %v633_v22 = vadd.f32 %v1552_v18, %v2347_v11 }
 0x166   : > { %v789_v23 = vmax.f32 %v727_v21, 0.0  ;;  %v730_v27 = vadd.f32 %v729_v20, %v633_v22  ;;  %v1553_v28 = vpop.f32.mrb[4].mxu0 }
 0x167   : > { %v1554_v42 = vpop.f32.mrb[5].mxu0 }
 0x168   : > { %805 = vst [vmem:[#allocation2 + $0x8] sm:$0xff] %v789_v23  ;;  %v790_v43 = vmax.f32 %v730_v27, 0.0  ;;  %v1555_v44 = vadd.f32 %v1554_v42, %v1553_v28  ;;  %v1556_v45 = vpop.f32.mrb[6].mxu0  ;;  %v2351_v46 = vpop.f32.mrb[4].mxu1 }
 0x169   : > { %v1557_v47 = vpop.f32.mrb[7].mxu0  ;;  %v742_v48 = vpop.f32.mrb[5].mxu1 }
 0x16a   : > { %806 = vst [vmem:[#allocation2 + $0x10] sm:$0xff] %v790_v43  ;;  %v638_v49 = vadd.f32 %v1555_v44, %v2347_v11  ;;  %v1558_v50 = vadd.f32 %v1557_v47, %v1556_v45  ;;  %v2354_v51 = vpop.f32.mrb[6].mxu1  ;;  %v870_v52 = vpack.c.bf16 %v790_v43, %v789_v23 }
 0x16b   : > { %v745_v53 = vpop.f32.mrb[7].mxu1 }
 0x16c   : > { %v735_v54 = vadd.f32 %v1709_v13, %v638_v49  ;;  %v641_v55 = vadd.f32 %v1558_v50, %v2347_v11  ;;  %1140 = vmatprep.mubr.bf16.mxu1 %v870_v52 }
 0x16e   : > { %v791_v56 = vmax.f32 %v735_v54, 0.0  ;;  %v738_v57 = vadd.f32 %v1710_v19, %v641_v55  ;;  %v1559_v58 = vpop.f32.mrb[8].mxu0 }
 0x16f   : > { %v1560_v59 = vpop.f32.mrb[9].mxu0  ;;  %v821_v63 = vld [vmem:[#allocation2 + $0x7] sm:$0xff] }
 0x170   : > { %807 = vst [vmem:[#allocation2 + $0x28] sm:$0xff] %v791_v56  ;;  %v792_v60 = vmax.f32 %v738_v57, 0.0  ;;  %v1561_v61 = vadd.f32 %v1560_v59, %v1559_v58  ;;  %v1562_v62 = vpop.f32.mrb[10].mxu0  ;;  %v2357_v0 = vpop.f32.mrb[8].mxu1 }
 0x171   : > { %v1563_v1 = vpop.f32.mrb[11].mxu0  ;;  %v853_v2 = vld [vmem:[#allocation2 + $0x9] sm:$0xff]  ;;  %v854_v3 = vld [vmem:[#allocation2 + $0x11] sm:$0xff]  ;;  %v758_v5 = vpop.f32.mrb[9].mxu1 }
 0x172   : > { %v822_v4 = vld [vmem:[#allocation2 + $0xf] sm:$0xff]  ;;  %808 = vst [vmem:[#allocation2 + $0x30] sm:$0xff] %v792_v60  ;;  %v646_v6 = vadd.f32 %v1561_v61, %v2347_v11  ;;  %v1564_v7 = vadd.f32 %v1563_v1, %v1562_v62  ;;  %v871_v8 = vpack.c.bf16 %v854_v3, %v853_v2  ;;  %v2360_v10 = vpop.f32.mrb[10].mxu1  ;;  %v873_v12 = vpack.c.bf16 %v792_v60, %v791_v56 }
 0x173   : > { %v869_v9 = vpack.c.bf16 %v822_v4, %v821_v63  ;;  %v761_v13 = vpop.f32.mrb[11].mxu1 }
 0x174   : > { %v743_v14 = vadd.f32 %v742_v48, %v646_v6  ;;  %v649_v15 = vadd.f32 %v1564_v7, %v2347_v11  ;;  %1739 = vmatprep.mubr.bf16.mxu0 %v871_v8 }
 0x175   : > { %1141 = vmatmul.mubr.bf16.vlgmr.msra.gmra.mrb[16].mxu1 %v869_v9 }
 0x176   : > { %1148 = vmatprep.mubr.bf16.mxu1 %v873_v12  ;;  %v793_v16 = vmax.f32 %v743_v14, 0.0  ;;  %v746_v17 = vadd.f32 %v745_v53, %v649_v15  ;;  %v1565_v18 = vpop.f32.mrb[12].mxu0 }
 0x177   : > { %v1566_v19 = vpop.f32.mrb[13].mxu0  ;;  %v823_v23 = vld [vmem:[#allocation2 + $0x27] sm:$0xff] }
 0x178   : > { %809 = vst [vmem:[#allocation2 + $0x48] sm:$0xff] %v793_v16  ;;  %v794_v20 = vmax.f32 %v746_v17, 0.0  ;;  %v1567_v21 = vadd.f32 %v1566_v19, %v1565_v18  ;;  %v1568_v22 = vpop.f32.mrb[14].mxu0  ;;  %v2363_v27 = vpop.f32.mrb[12].mxu1 }
 0x179   : > { %v1569_v28 = vpop.f32.mrb[15].mxu0  ;;  %v855_v42 = vld [vmem:[#allocation2 + $0x29] sm:$0xff]  ;;  %v856_v43 = vld [vmem:[#allocation2 + $0x31] sm:$0xff]  ;;  %v2365_v45 = vpop.f32.mrb[13].mxu1 }
 0x17a   : > { %v824_v44 = vld [vmem:[#allocation2 + $0x2f] sm:$0xff]  ;;  %810 = vst [vmem:[#allocation2 + $0x50] sm:$0xff] %v794_v20  ;;  %v654_v47 = vadd.f32 %v1567_v21, %v2347_v11  ;;  %v1570_v48 = vadd.f32 %v1569_v28, %v1568_v22  ;;  %v874_v49 = vpack.c.bf16 %v856_v43, %v855_v42  ;;  %v2368_v52 = vpop.f32.mrb[14].mxu1  ;;  %v876_v53 = vpack.c.bf16 %v794_v20, %v793_v16 }
 0x17b   : > { %v872_v50 = vpack.c.bf16 %v824_v44, %v823_v23  ;;  %v2370_v54 = vpop.f32.mrb[15].mxu1 }
 0x17c   : > { %v751_v55 = vadd.f32 %v2351_v46, %v654_v47  ;;  %v657_v56 = vadd.f32 %v1570_v48, %v2347_v11  ;;  %1740 = vmatmul.mubr.bf16.vlgmr.msra.gmra.mrb[32].mxu0 %v874_v49 }
 0x17d   : > { %1149 = vmatmul.mubr.bf16.gmra.mrb[20].mxu1 %v872_v50 }
 0x17e   : > { %1156 = vmatprep.mubr.bf16.mxu1 %v876_v53  ;;  %v795_v57 = vmax.f32 %v751_v55, 0.0  ;;  %v754_v58 = vadd.f32 %v2354_v51, %v657_v56  ;;  %v1571_v59 = vpop.f32.mrb[16].mxu0 }
 0x17f   : > { %v1572_v60 = vpop.f32.mrb[17].mxu0  ;;  %v825_v1 = vld [vmem:[#allocation2 + $0x47] sm:$0xff] }
 0x180   : > { %811 = vst [vmem:[#allocation2 + $0x68] sm:$0xff] %v795_v57  ;;  %v796_v61 = vmax.f32 %v754_v58, 0.0  ;;  %v1573_v62 = vadd.f32 %v1572_v60, %v1571_v59  ;;  %v1574_v63 = vpop.f32.mrb[18].mxu0 }
 0x181   : > { %v1575_v2 = vpop.f32.mrb[19].mxu0  ;;  %v857_v3 = vld [vmem:[#allocation2 + $0x49] sm:$0xff]  ;;  %v858_v4 = vld [vmem:[#allocation2 + $0x51] sm:$0xff] }
 0x182   : > { %v826_v6 = vld [vmem:[#allocation2 + $0x4f] sm:$0xff]  ;;  %812 = vst [vmem:[#allocation2 + $0x70] sm:$0xff] %v796_v61  ;;  %v662_v46 = vadd.f32 %v1573_v62, %v2347_v11  ;;  %v1576_v7 = vadd.f32 %v1575_v2, %v1574_v63  ;;  %v877_v8 = vpack.c.bf16 %v858_v4, %v857_v3  ;;  %v879_v12 = vpack.c.bf16 %v796_v61, %v795_v57 }
 0x183   : > { %v875_v9 = vpack.c.bf16 %v826_v6, %v825_v1 }
 0x184   : > { %v759_v14 = vadd.f32 %v758_v5, %v662_v46  ;;  %v665_v51 = vadd.f32 %v1576_v7, %v2347_v11  ;;  %1743 = vmatprep.mubr.bf16.mxu0 %v877_v8 }
 0x185   : > { %1157 = vmatmul.mubr.bf16.gmra.mrb[24].mxu1 %v875_v9 }
 0x186   : > { %1164 = vmatprep.mubr.bf16.mxu1 %v879_v12  ;;  %v797_v15 = vmax.f32 %v759_v14, 0.0  ;;  %v762_v16 = vadd.f32 %v761_v13, %v665_v51  ;;  %v1577_v17 = vpop.f32.mrb[20].mxu0 }
 0x187   : > { %v1578_v18 = vpop.f32.mrb[21].mxu0  ;;  %v827_v22 = vld [vmem:[#allocation2 + $0x67] sm:$0xff] }
 0x188   : > { %813 = vst [vmem:[#allocation2 + $0x88] sm:$0xff] %v797_v15  ;;  %v798_v19 = vmax.f32 %v762_v16, 0.0  ;;  %v1579_v20 = vadd.f32 %v1578_v18, %v1577_v17  ;;  %v1580_v21 = vpop.f32.mrb[22].mxu0 }
 0x189   : > { %v1581_v23 = vpop.f32.mrb[23].mxu0  ;;  %v859_v28 = vld [vmem:[#allocation2 + $0x69] sm:$0xff]  ;;  %v860_v42 = vld [vmem:[#allocation2 + $0x71] sm:$0xff] }
 0x18a   : > { %v828_v43 = vld [vmem:[#allocation2 + $0x6f] sm:$0xff]  ;;  %814 = vst [vmem:[#allocation2 + $0x90] sm:$0xff] %v798_v19  ;;  %v670_v5 = vadd.f32 %v1579_v20, %v2347_v11  ;;  %v1582_v44 = vadd.f32 %v1581_v23, %v1580_v21  ;;  %v880_v47 = vpack.c.bf16 %v860_v42, %v859_v28  ;;  %v882_v49 = vpack.c.bf16 %v798_v19, %v797_v15 }
 0x18b   : > { %v878_v48 = vpack.c.bf16 %v828_v43, %v827_v22 }
 0x18c   : > { %v767_v13 = vadd.f32 %v2357_v0, %v670_v5  ;;  %v673_v50 = vadd.f32 %v1582_v44, %v2347_v11  ;;  %1744 = vmatmul.mubr.bf16.gmra.mrb[36].mxu0 %v880_v47 }
 0x18d   : > { %1165 = vmatmul.mubr.bf16.gmra.mrb[28].mxu1 %v878_v48 }
 0x18e   : > { %1172 = vmatprep.mubr.bf16.mxu1 %v882_v49  ;;  %v799_v53 = vmax.f32 %v767_v13, 0.0  ;;  %v770_v55 = vadd.f32 %v2360_v10, %v673_v50  ;;  %v1583_v56 = vpop.f32.mrb[24].mxu0 }
 0x18f   : > { %v1584_v57 = vpop.f32.mrb[25].mxu0  ;;  %v829_v61 = vld [vmem:[#allocation2 + $0x87] sm:$0xff] }
 0x190   : > { %815 = vst [vmem:[#allocation2 + $0xa8] sm:$0xff] %v799_v53  ;;  %v800_v58 = vmax.f32 %v770_v55, 0.0  ;;  %v1585_v59 = vadd.f32 %v1584_v57, %v1583_v56  ;;  %v1586_v60 = vpop.f32.mrb[26].mxu0 }
 0x191   : > { %v1587_v62 = vpop.f32.mrb[27].mxu0  ;;  %v861_v63 = vld [vmem:[#allocation2 + $0x89] sm:$0xff]  ;;  %v862_v1 = vld [vmem:[#allocation2 + $0x91] sm:$0xff] }
 0x192   : > { %v830_v2 = vld [vmem:[#allocation2 + $0x8f] sm:$0xff]  ;;  %816 = vst [vmem:[#allocation2 + $0xb0] sm:$0xff] %v800_v58  ;;  %v678_v0 = vadd.f32 %v1585_v59, %v2347_v11  ;;  %v1588_v3 = vadd.f32 %v1587_v62, %v1586_v60  ;;  %v883_v4 = vpack.c.bf16 %v862_v1, %v861_v63  ;;  %v885_v46 = vpack.c.bf16 %v800_v58, %v799_v53 }
 0x193   : > { %v881_v6 = vpack.c.bf16 %v830_v2, %v829_v61 }
 0x194   : > { %v775_v10 = vadd.f32 %v2365_v45, %v678_v0  ;;  %v681_v7 = vadd.f32 %v1588_v3, %v2347_v11  ;;  %1747 = vmatprep.mubr.bf16.mxu0 %v883_v4  ;;  %v2392_v0 = vld [vmem:[%s2501_s4] ss:$0 sm:$0xff] }
 0x195   : > { %1173 = vmatmul.mubr.bf16.gmra.mrb[32].mxu1 %v881_v6 }
 0x196   : > { %1180 = vmatprep.mubr.bf16.mxu1 %v885_v46  ;;  %v801_v8 = vmax.f32 %v775_v10, 0.0  ;;  %v778_v9 = vadd.f32 %v2370_v54, %v681_v7  ;;  %v1589_v12 = vpop.f32.mrb[28].mxu0 }
 0x197   : > { %v1590_v14 = vpop.f32.mrb[29].mxu0  ;;  %v831_v17 = vld [vmem:[#allocation2 + $0xa7] sm:$0xff] }
 0x198   : > { %817 = vst [vmem:[#allocation2 + $0xc8] sm:$0xff] %v801_v8  ;;  %v802_v51 = vmax.f32 %v778_v9, 0.0  ;;  %v1591_v15 = vadd.f32 %v1590_v14, %v1589_v12  ;;  %v1592_v16 = vpop.f32.mrb[30].mxu0 }
 0x199   : > { %v1593_v18 = vpop.f32.mrb[31].mxu0  ;;  %v863_v19 = vld [vmem:[#allocation2 + $0xa9] sm:$0xff]  ;;  %v864_v20 = vld [vmem:[#allocation2 + $0xb1] sm:$0xff] }
 0x19a   : > { %v832_v21 = vld [vmem:[#allocation2 + $0xaf] sm:$0xff]  ;;  %818 = vst [vmem:[#allocation2 + $0xd0] sm:$0xff] %v802_v51  ;;  %v686_v45 = vadd.f32 %v1591_v15, %v2347_v11  ;;  %v1594_v22 = vadd.f32 %v1593_v18, %v1592_v16  ;;  %v886_v23 = vpack.c.bf16 %v864_v20, %v863_v19  ;;  %v888_v42 = vpack.c.bf16 %v802_v51, %v801_v8 }
 0x19b   : > { %v884_v28 = vpack.c.bf16 %v832_v21, %v831_v17 }
 0x19c   : > { %v783_v54 = vadd.f32 %v2363_v27, %v686_v45  ;;  %v689_v43 = vadd.f32 %v1594_v22, %v2347_v11  ;;  %1748 = vmatmul.mubr.bf16.gmra.mrb[40].mxu0 %v886_v23 }
 0x19d   : > { %1181 = vmatmul.mubr.bf16.gmra.mrb[36].mxu1 %v884_v28 }
 0x19e   : > { %1188 = vmatprep.mubr.bf16.mxu1 %v888_v42  ;;  %v803_v5 = vmax.f32 %v783_v54, 0.0  ;;  %v786_v44 = vadd.f32 %v2368_v52, %v689_v43 }
 0x19f   : > { %v833_v48 = vld [vmem:[#allocation2 + $0xc7] sm:$0xff] }
 0x1a0   : > { %819 = vst [vmem:[#allocation2 + $0xe8] sm:$0xff] %v803_v5  ;;  %v804_v47 = vmax.f32 %v786_v44, 0.0 }
 0x1a1   : > { %v865_v49 = vld [vmem:[#allocation2 + $0xc9] sm:$0xff]  ;;  %v866_v13 = vld [vmem:[#allocation2 + $0xd1] sm:$0xff] }
 0x1a2   : > { %v834_v50 = vld [vmem:[#allocation2 + $0xcf] sm:$0xff]  ;;  %820 = vst [vmem:[#allocation2 + $0xf0] sm:$0xff] %v804_v47  ;;  %v889_v53 = vpack.c.bf16 %v866_v13, %v865_v49  ;;  %v891_v56 = vpack.c.bf16 %v804_v47, %v803_v5 }
 0x1a3   : > { %v887_v55 = vpack.c.bf16 %v834_v50, %v833_v48 }
 0x1a4   : > { %1751 = vmatprep.mubr.bf16.mxu0 %v889_v53 }
 0x1a5   : > { %1189 = vmatmul.mubr.bf16.gmra.mrb[40].mxu1 %v887_v55 }
 0x1a6   : > { %1196 = vmatprep.mubr.bf16.mxu1 %v891_v56 }
 0x1a7   : > { %v835_v11 = vld [vmem:[#allocation2 + $0xe7] sm:$0xff] }
 0x1a9   : > { %v867_v27 = vld [vmem:[#allocation2 + $0xe9] sm:$0xff]  ;;  %v868_v57 = vld [vmem:[#allocation2 + $0xf1] sm:$0xff] }
 0x1aa   : > { %v836_v58 = vld [vmem:[#allocation2 + $0xef] sm:$0xff]  ;;  %v892_v59 = vpack.c.bf16 %v868_v57, %v867_v27 }
 0x1ab   : > { %v890_v60 = vpack.c.bf16 %v836_v58, %v835_v11 }
 0x1ac   : > { %1752 = vmatmul.mubr.bf16.gmra.mrb[44].mxu0 %v892_v59 }
 0x1ad   : > { %1197 = vmatmul.mubr.bf16.gmra.mrb[44].mxu1 %v890_v60 }
 0x248   : > { %v1627_v52 = vpop.f32.mrb[16].mxu1 }
 0x249   : > { %v1628_v61 = vpop.f32.mrb[17].mxu1 }
 0x24a   : > { %v1629_v62 = vadd.f32 %v1628_v61, %v1627_v52  ;;  %v1630_v63 = vpop.f32.mrb[18].mxu1 }
 0x24b   : > { %v1631_v1 = vpop.f32.mrb[19].mxu1 }
 0x24c   : > { %v1632_v2 = vadd.f32 %v1631_v1, %v1630_v63  ;;  %v1143_v6 = vadd.f32 %v1629_v62, %v2392_v0 }
 0x24e   : > { %v1146_v14 = vadd.f32 %v1632_v2, %v2392_v0 }
 0x24f   : > { %v1741_v3 = vpop.f32.mrb[32].mxu0 }
 0x250   : > { %v1633_v4 = vpop.f32.mrb[20].mxu1  ;;  %v1239_v46 = vpop.f32.mrb[33].mxu0 }
 0x251   : > { %v1634_v10 = vpop.f32.mrb[21].mxu1  ;;  %v1240_v7 = vadd.f32 %v1239_v46, %v1143_v6  ;;  %v1742_v9 = vpop.f32.mrb[34].mxu0 }
 0x252   : > { %v1635_v8 = vadd.f32 %v1634_v10, %v1633_v4  ;;  %v1636_v12 = vpop.f32.mrb[22].mxu1  ;;  %v1242_v51 = vpop.f32.mrb[35].mxu0 }
 0x253   : > { %v1637_v15 = vpop.f32.mrb[23].mxu1  ;;  %v1302_v16 = vadd.f32 %v1240_v7, %v2265_v24  ;;  %v1243_v18 = vadd.f32 %v1242_v51, %v1146_v14 }
 0x254   : > { %v1151_v17 = vadd.f32 %v1635_v8, %v2392_v0  ;;  %v1638_v19 = vadd.f32 %v1637_v15, %v1636_v12 }
 0x255   : > { %v1318_v20 = vmax.f32 %v1302_v16, 0.0  ;;  %v1303_v45 = vadd.f32 %v1243_v18, %v2268_v25 }
 0x256   : > { %v1248_v21 = vadd.f32 %v1741_v3, %v1151_v17  ;;  %v1154_v22 = vadd.f32 %v1638_v19, %v2392_v0 }
 0x257   : > { %1334 = vst [vmem:[%s2402_s11] sm:$0xff] %v1318_v20  ;;  %v1319_v23 = vmax.f32 %v1303_v45, 0.0 }
 0x258   : > { %v1304_v24 = vadd.f32 %v1248_v21, %v2271_v26  ;;  %v1251_v28 = vadd.f32 %v1742_v9, %v1154_v22  ;;  %v1639_v42 = vpop.f32.mrb[24].mxu1 }
 0x259   : > { %v1640_v54 = vpop.f32.mrb[25].mxu1  ;;  %1335 = vst [vmem:[%s2402_s11 + $0x8] sm:$0xff] %v1319_v23 }
 0x25a   : > { %v1320_v43 = vmax.f32 %v1304_v24, 0.0  ;;  %v1305_v25 = vadd.f32 %v1251_v28, %v2278_v29  ;;  %v1641_v5 = vadd.f32 %v1640_v54, %v1639_v42  ;;  %v1642_v44 = vpop.f32.mrb[26].mxu1 }
 0x25b   : > { %v1643_v47 = vpop.f32.mrb[27].mxu1 }
 0x25c   : > { %1336 = vst [vmem:[%s2402_s11 + $0x10] sm:$0xff] %v1320_v43  ;;  %v1321_v48 = vmax.f32 %v1305_v25, 0.0  ;;  %v1644_v49 = vadd.f32 %v1643_v47, %v1642_v44  ;;  %v1159_v53 = vadd.f32 %v1641_v5, %v2392_v0 }
 0x25e   : > { %1337 = vst [vmem:[%s2402_s11 + $0x18] sm:$0xff] %v1321_v48  ;;  %v1162_v29 = vadd.f32 %v1644_v49, %v2392_v0 }
 0x25f   : > { %v1745_v13 = vpop.f32.mrb[36].mxu0 }
 0x260   : > { %v1645_v50 = vpop.f32.mrb[28].mxu1  ;;  %v1255_v26 = vpop.f32.mrb[37].mxu0 }
 0x261   : > { %v1646_v55 = vpop.f32.mrb[29].mxu1  ;;  %v1256_v56 = vadd.f32 %v1255_v26, %v1159_v53  ;;  %v1746_v27 = vpop.f32.mrb[38].mxu0 }
 0x262   : > { %v1647_v11 = vadd.f32 %v1646_v55, %v1645_v50  ;;  %v1648_v57 = vpop.f32.mrb[30].mxu1  ;;  %v1258_v58 = vpop.f32.mrb[39].mxu0 }
 0x263   : > { %v1649_v59 = vpop.f32.mrb[31].mxu1  ;;  %v1306_v60 = vadd.f32 %v1256_v56, %v2282_v30  ;;  %v1259_v61 = vadd.f32 %v1258_v58, %v1162_v29 }
 0x264   : > { %v1167_v52 = vadd.f32 %v1647_v11, %v2392_v0  ;;  %v1650_v62 = vadd.f32 %v1649_v59, %v1648_v57 }
 0x265   : > { %v1322_v63 = vmax.f32 %v1306_v60, 0.0  ;;  %v1307_v2 = vadd.f32 %v1259_v61, %v2285_v31 }
 0x266   : > { %v1264_v1 = vadd.f32 %v1745_v13, %v1167_v52  ;;  %v1170_v3 = vadd.f32 %v1650_v62, %v2392_v0 }
 0x267   : > { %1338 = vst [vmem:[%s2402_s11 + $0x20] sm:$0xff] %v1322_v63  ;;  %v1323_v6 = vmax.f32 %v1307_v2, 0.0 }
 0x268   : > { %v1308_v4 = vadd.f32 %v1264_v1, %v2291_v32  ;;  %v1267_v46 = vadd.f32 %v1746_v27, %v1170_v3  ;;  %v1651_v10 = vpop.f32.mrb[32].mxu1 }
 0x269   : > { %v1652_v7 = vpop.f32.mrb[33].mxu1  ;;  %1339 = vst [vmem:[%s2402_s11 + $0x28] sm:$0xff] %v1323_v6 }
 0x26a   : > { %v1324_v30 = vmax.f32 %v1308_v4, 0.0  ;;  %v1309_v8 = vadd.f32 %v1267_v46, %v2294_v33  ;;  %v1653_v9 = vadd.f32 %v1652_v7, %v1651_v10  ;;  %v1654_v12 = vpop.f32.mrb[34].mxu1 }
 0x26b   : > { %v1655_v14 = vpop.f32.mrb[35].mxu1 }
 0x26c   : > { %1340 = vst [vmem:[%s2402_s11 + $0x30] sm:$0xff] %v1324_v30  ;;  %v1325_v51 = vmax.f32 %v1309_v8, 0.0  ;;  %v1656_v31 = vadd.f32 %v1655_v14, %v1654_v12  ;;  %v1175_v17 = vadd.f32 %v1653_v9, %v2392_v0 }
 0x26e   : > { %1341 = vst [vmem:[%s2402_s11 + $0x38] sm:$0xff] %v1325_v51  ;;  %v1178_v33 = vadd.f32 %v1656_v31, %v2392_v0 }
 0x26f   : > { %v1749_v15 = vpop.f32.mrb[40].mxu0 }
 0x270   : > { %v1657_v16 = vpop.f32.mrb[36].mxu1  ;;  %v1271_v32 = vpop.f32.mrb[41].mxu0 }
 0x271   : > { %v1658_v18 = vpop.f32.mrb[37].mxu1  ;;  %v1272_v19 = vadd.f32 %v1271_v32, %v1175_v17  ;;  %v1750_v21 = vpop.f32.mrb[42].mxu0 }
 0x272   : > { %v1659_v20 = vadd.f32 %v1658_v18, %v1657_v16  ;;  %v1660_v45 = vpop.f32.mrb[38].mxu1  ;;  %v1274_v22 = vpop.f32.mrb[43].mxu0 }
 0x273   : > { %v1661_v24 = vpop.f32.mrb[39].mxu1  ;;  %v1310_v23 = vadd.f32 %v1272_v19, %v2297_v34  ;;  %v1275_v42 = vadd.f32 %v1274_v22, %v1178_v33 }
 0x274   : > { %v1183_v28 = vadd.f32 %v1659_v20, %v2392_v0  ;;  %v1662_v54 = vadd.f32 %v1661_v24, %v1660_v45 }
 0x275   : > { %v1326_v43 = vmax.f32 %v1310_v23, 0.0  ;;  %v1311_v5 = vadd.f32 %v1275_v42, %v2302_v35 }
 0x276   : > { %v1280_v25 = vadd.f32 %v1749_v15, %v1183_v28  ;;  %v1186_v44 = vadd.f32 %v1662_v54, %v2392_v0 }
 0x277   : > { %1342 = vst [vmem:[%s2402_s11 + $0x40] sm:$0xff] %v1326_v43  ;;  %v1327_v48 = vmax.f32 %v1311_v5, 0.0 }
 0x278   : > { %v1312_v47 = vadd.f32 %v1280_v25, %v2306_v36  ;;  %v1283_v49 = vadd.f32 %v1750_v21, %v1186_v44  ;;  %v1663_v13 = vpop.f32.mrb[40].mxu1 }
 0x279   : > { %v1664_v50 = vpop.f32.mrb[41].mxu1  ;;  %1343 = vst [vmem:[%s2402_s11 + $0x48] sm:$0xff] %v1327_v48 }
 0x27a   : > { %v1328_v34 = vmax.f32 %v1312_v47, 0.0  ;;  %v1313_v53 = vadd.f32 %v1283_v49, %v2309_v37  ;;  %v1665_v26 = vadd.f32 %v1664_v50, %v1663_v13  ;;  %v1666_v55 = vpop.f32.mrb[42].mxu1 }
 0x27b   : > { %v1667_v56 = vpop.f32.mrb[43].mxu1 }
 0x27c   : > { %1344 = vst [vmem:[%s2402_s11 + $0x50] sm:$0xff] %v1328_v34  ;;  %v1329_v11 = vmax.f32 %v1313_v53, 0.0  ;;  %v1668_v35 = vadd.f32 %v1667_v56, %v1666_v55  ;;  %v1191_v29 = vadd.f32 %v1665_v26, %v2392_v0 }
 0x27e   : > { %1345 = vst [vmem:[%s2402_s11 + $0x58] sm:$0xff] %v1329_v11  ;;  %v1194_v37 = vadd.f32 %v1668_v35, %v2392_v0 }
 0x27f   : > { %v1753_v27 = vpop.f32.mrb[44].mxu0 }
 0x280   : > { %v1669_v57 = vpop.f32.mrb[44].mxu1  ;;  %v1287_v36 = vpop.f32.mrb[45].mxu0 }
 0x281   : > { %v1670_v58 = vpop.f32.mrb[45].mxu1  ;;  %v1288_v59 = vadd.f32 %v1287_v36, %v1191_v29  ;;  %v1754_v52 = vpop.f32.mrb[46].mxu0 }
 0x282   : > { %v1671_v60 = vadd.f32 %v1670_v58, %v1669_v57  ;;  %v1672_v61 = vpop.f32.mrb[46].mxu1  ;;  %v1290_v62 = vpop.f32.mrb[47].mxu0 }
 0x283   : > { %v1673_v63 = vpop.f32.mrb[47].mxu1  ;;  %v1314_v1 = vadd.f32 %v1288_v59, %v2315_v38  ;;  %v1291_v3 = vadd.f32 %v1290_v62, %v1194_v37 }
 0x284   : > { %v1199_v2 = vadd.f32 %v1671_v60, %v2392_v0  ;;  %v1674_v4 = vadd.f32 %v1673_v63, %v1672_v61 }
 0x285   : > { %v1330_v6 = vmax.f32 %v1314_v1, 0.0  ;;  %v1315_v10 = vadd.f32 %v1291_v3, %v2318_v39 }
 0x286   : > { %v1296_v46 = vadd.f32 %v1753_v27, %v1199_v2  ;;  %v1202_v7 = vadd.f32 %v1674_v4, %v2392_v0 }
 0x287   : > { %1346 = vst [vmem:[%s2402_s11 + $0x60] sm:$0xff] %v1330_v6  ;;  %v1331_v8 = vmax.f32 %v1315_v10, 0.0 }
 0x288   : > { %v1316_v30 = vadd.f32 %v1296_v46, %v2321_v40  ;;  %v1299_v9 = vadd.f32 %v1754_v52, %v1202_v7 }
 0x289   : > { %1347 = vst [vmem:[%s2402_s11 + $0x68] sm:$0xff] %v1331_v8 }
 0x28a   : > { %v1332_v38 = vmax.f32 %v1316_v30, 0.0  ;;  %v1317_v12 = vadd.f32 %v1299_v9, %v2326_v41 }
 0x28c   : > { %1348 = vst [vmem:[%s2402_s11 + $0x70] sm:$0xff] %v1332_v38  ;;  %v1333_v39 = vmax.f32 %v1317_v12, 0.0 }
 0x28e   : > { %1349 = vst [vmem:[%s2402_s11 + $0x78] sm:$0xff] %v1333_v39 }
 0x28f   : > { %1976 = shalt.err (!%p1973_p2)
}
 0x290   : > { %s1977_s6 = scalar_lea.hbm %s2449_s9, 2048  ;;  %s1981_s8 = scalar_lea.hbm %s2502_s5, 4096 }
 0x291   : > { %p1978_p13 = scmp.ne.s32.totalorder %s2449_s9, %s1977_s6  ;;  %p1982_p4 = scmp.lt.u32.totalorder %s2449_s9, %s2502_s5 }
 0x292   : > { %p1983_p5 = scmp.lt.u32.totalorder %s1981_s8, %s1977_s6  ;;  %p1985_p11 = scmp.lt.u32.totalorder %s1977_s6, %s2449_s9 }
 0x293   : > { %p1979_p6 = pnand %p1978_p13, %p2516_p0 }
 0x294   : > { %p1984_p8 = por %p1983_p5, %p1982_p4 }
 0x295   : > { %p1980_p10 = pneg %p1979_p6 }
 0x296   : > { %p1986_p1 = por %p1985_p11, %p1984_p8 }
 0x298   : > { %p1987_p3 = pnand %p1986_p1, %p1980_p10 }
 0x29a   : > { %1990 = shalt.err (!%p1987_p3)
}
 0x29b   : > { %s2044_s28 = smov 128   ;;  %s2045_s15 = smov 8  }
 0x29c   : > { %1765 = dma.vmem_to_hbm [thread:$0]  (%p2516_p0), %s2451_s30, 2048, %s2449_s9, %s1351_s12, %s2044_s28, %s2044_s28, %s2045_s15  }
 0x29d PF: > { %s1380_s16 = sand.u32 1, %s2021_s18   ;;  %p2517_p7 = scmp.ne.s32.totalorder %s2507_s25, 0 }
 0x29e   : > { %p2518_p9 = scmp.ge.s32.totalorder %s2033_s21, 2  ;;  %s1381_s22 = scalar_lea.sflag [#allocation5], %s1380_s16 }
 0x2a0   : > { %p1779_p12 = pnand %p2518_p9, %p2517_p7 }
 0x2a2   : > { %2016 = dma.done.wait (!%p1779_p12), %s1381_s22, 2048  }
 0x2a3   : > { %2018 = vsyncadd (!%p1779_p12), %s1381_s22, 4294965248  ;;  %p19_p2 = scmp.ge.s32.totalorder %s2186_s14, 4   ;;  %s2519_s18 = smov %s2025_s19 }
 0x2a4   : > { %s2520_s19 = smov %s2029_s20  ;;  %s2521_s20 = smov %s2202_s27 }
 0x2a5   : > { %s2522_s21 = smov %s2186_s14  ;;  %21 = sbr.rel (!%p19_p2) target bundleno = 6 (0x6), region = 93 }
 0x2ac   :  { %1386 = vsyncpa [#allocation4], 1 }
 0x2ad   :  { %1388 = vsyncpa [#allocation4 + $0x1], 1 }
 0x2ae   :  { %1389 = vsyncpa [#allocation7], 1 }
 0x2af   :  { %1390 = vsyncpa [#allocation5], 1 }
 0x2b0   :  { %1392 = vsyncpa [#allocation5 + $0x1], 1 }

</bundles_post_ra>
